<compile_context>
chip_gen: v7x
topology: tpu7x:2x2x1
jax: 0.10.0
libtpu: 0.0.40
codegen_flags: <defaults>
</compile_context>

<pallas_src>
import jax
import jax.numpy as jnp
from jax.experimental import pallas as pl
from jax.experimental.pallas import tpu as pltpu

LANE = 128          # lane width; hidden/output feature dims are padded to 128
W_ROWS = 128        # rows [0,128) of a layer slab = weight matrix (in x out)
PARAM_ROWS = 136    # + 8 sublane-aligned rows; row 128 = bias, rest zero
NUM_LAYERS = 3
HIDDEN = 50
SUB = 128           # rows processed per in-kernel sub-chunk (bounds vreg use)


def _mlp_block(x, p_ref):
    """x: (n, in_f) f32 value -> (n, 128) f32 value (3 layers, ReLU on 1 & 2)."""
    in_f = x.shape[-1]
    h = x
    for layer in range(NUM_LAYERS):                       # unrolled at trace time
        base = layer * PARAM_ROWS                         # static, 8-aligned
        k = in_f if layer == 0 else LANE                  # layer 0: contract only
        w = p_ref[base:base + k, :]                       #   the real in_f rows
        b = p_ref[base + W_ROWS:base + W_ROWS + 1, :]     # (1, 128) bias row
        h = jnp.dot(h, w, preferred_element_type=jnp.float32) + b
        if layer < NUM_LAYERS - 1:
            h = jnp.maximum(h, 0.0)                       # ReLU on fc1/fc2 only
    return h


def mlp_kernel(x_ref, p_ref, o_ref):
    """x_ref: (rows, in_f) raw state tile (no lane padding).
    p_ref: (3*136, 128) packed params (see pack_params).
    o_ref: (rows, out_w); out_w = nb_action (small path) or 128 (gridded)."""
    rows, _ = x_ref.shape
    out_w = o_ref.shape[-1]
    n_full = rows // SUB
    rem = rows - n_full * SUB

    def compute(x_tile):
        h = _mlp_block(x_tile, p_ref)
        return h if out_w == LANE else h[:, :out_w]

    if n_full > 0:
        def body(c, carry):
            off = pl.multiple_of(c * SUB, SUB)
            o_ref[pl.ds(off, SUB), :] = compute(x_ref[pl.ds(off, SUB), :])
            return carry
        jax.lax.fori_loop(0, n_full, body, 0)
    if rem > 0:
        start = n_full * SUB
        o_ref[pl.ds(start, rem), :] = compute(x_ref[pl.ds(start, rem), :])


def pack_params(params):
    """Pack (w1,b1,w2,b2,w3,b3) into a single (3*136, 128) f32 slab.

    NOTE: weights must be stored [in_features, out_features] (i.e. TRANSPOSED
    vs torch.nn.Linear.weight); biases are (1, out_features).  Padding rows /
    columns are zero, so padded activation lanes stay exactly 0 every layer."""
    layers = [(params[0], params[1]), (params[2], params[3]), (params[4], params[5])]
    slabs = []
    for w, b in layers:
        in_f, out_f = w.shape
        assert in_f <= W_ROWS and out_f <= LANE, "feature dims must be <= 128"
        assert b.size == out_f, "bias must match weight's out_features ([in,out] layout)"
        wp = jnp.zeros((W_ROWS, LANE), jnp.float32).at[:in_f, :out_f].set(w)
        bp = jnp.zeros((PARAM_ROWS - W_ROWS, LANE), jnp.float32)
        bp = bp.at[0:1, :out_f].set(b.reshape(1, out_f).astype(jnp.float32))
        slabs.append(jnp.concatenate([wp, bp], axis=0))   # (136, 128)
    return jnp.concatenate(slabs, axis=0)                 # (408, 128)


def network_forward(state, packed_params, nb_action, *, batch_tile=1024):
    """Pallas forward pass. `packed_params` comes from pack_params()."""
    batch, in_f = state.shape
    assert in_f <= LANE and nb_action <= LANE
    assert batch_tile % SUB == 0
    x = state.astype(jnp.float32)                         # no host-side padding
    vmem = pl.BlockSpec(memory_space=pltpu.MemorySpace.VMEM)

    if batch <= batch_tile:
        # Inference / small batch: one grid-less call, two input DMAs, output
        # written directly as (batch, nb_action) -> the forward is a single HLO.
        return pl.pallas_call(
            mlp_kernel,
            out_shape=jax.ShapeDtypeStruct((batch, nb_action), jnp.float32),
            in_specs=[vmem, vmem],
            out_specs=vmem,
        )(x, packed_params)

    # Training-scale batch: stream the raw state and the lane-dense output in
    # batch_tile-row blocks; the tiny param slab is one full-array block with a
    # constant index map (fetched once).  A ragged last tile is handled by
    # Pallas block clipping, so no host-side pad of the batch dimension.
    grid = pl.cdiv(batch, batch_tile)
    out = pl.pallas_call(
        mlp_kernel,
        out_shape=jax.ShapeDtypeStruct((batch, LANE), jnp.float32),
        grid_spec=pltpu.PrefetchScalarGridSpec(
            num_scalar_prefetch=0,
            grid=(grid,),
            in_specs=[
                pl.BlockSpec((batch_tile, in_f), lambda i: (i, 0)),
                pl.BlockSpec((NUM_LAYERS * PARAM_ROWS, LANE), lambda i: (0, 0)),
            ],
            out_specs=pl.BlockSpec((batch_tile, LANE), lambda i: (i, 0)),
        ),
        # "parallel" lets the runtime shard the batch axis across both
        # TensorCores on v7x; harmless on single-TC v5e / v6e.
        compiler_params=pltpu.CompilerParams(
            dimension_semantics=("parallel",)),
    )(x, packed_params)
    return out[:, :nb_action]


def init_params(key, input_size, nb_action):
    """Deterministic init mimicking nn.Linear's U(-1/sqrt(fan_in), 1/sqrt(fan_in))."""
    ks = jax.random.split(key, 6)

    def linear(kw, kb, fan_in, fan_out):
        bound = 1.0 / jnp.sqrt(jnp.float32(fan_in))
        w = jax.random.uniform(kw, (fan_in, fan_out), jnp.float32, -bound, bound)
        b = jax.random.uniform(kb, (1, fan_out), jnp.float32, -bound, bound)
        return w, b

    w1, b1 = linear(ks[0], ks[1], input_size, HIDDEN)
    w2, b2 = linear(ks[2], ks[3], HIDDEN, HIDDEN)
    w3, b3 = linear(ks[4], ks[5], HIDDEN, nb_action)
    return (w1, b1, w2, b2, w3, b3)


def network_forward_ref(state, params):
    """Pure-JAX reference."""
    w1, b1, w2, b2, w3, b3 = params
    x = jnp.maximum(state @ w1 + b1, 0.0)
    x = jnp.maximum(x @ w2 + b2, 0.0)
    return x @ w3 + b3


if __name__ == "__main__":
    key = jax.random.PRNGKey(0)
    k_params, k_state, k_big, k_rag = jax.random.split(key, 4)

    input_size = 4   # sensor state vector (self-driving-car DQN style)
    nb_action = 3

    params = init_params(k_params, input_size, nb_action)
    packed = pack_params(params)             # pack once; reuse across calls

    # jit the wrapper so params are staged once and not re-sent per call
    fwd = jax.jit(network_forward, static_argnums=(2,),
                  static_argnames=("batch_tile",))

    # 1) tiny inference batch (grid-less path, direct (B, nb_action) output)
    state = jax.random.normal(k_state, (2, input_size), jnp.float32)
    q_values = jax.block_until_ready(fwd(state, packed, nb_action))
    ref = network_forward_ref(state, params)
    assert q_values.shape == (2, nb_action)
    assert jnp.allclose(q_values, ref, atol=1e-5, rtol=1e-5)

    # 2) gridded path, evenly tiled: 512 rows, 256-row tiles, 2 sub-chunks each
    big_state = jax.random.normal(k_big, (512, input_size), jnp.float32)
    q_big = jax.block_until_ready(fwd(big_state, packed, nb_action, batch_tile=256))
    ref_big = network_forward_ref(big_state, params)
    assert q_big.shape == (512, nb_action)
    assert jnp.allclose(q_big, ref_big, atol=1e-4, rtol=1e-4)

    # 3) gridded path with a ragged last tile (300 rows, 256-row tiles)
    rag_state = jax.random.normal(k_rag, (300, input_size), jnp.float32)
    q_rag = jax.block_until_ready(fwd(rag_state, packed, nb_action, batch_tile=256))
    ref_rag = network_forward_ref(rag_state, params)
    assert q_rag.shape == (300, nb_action)
    assert jnp.allclose(q_rag, ref_rag, atol=1e-4, rtol=1e-4)

    print("KERNEL_OK")
</pallas_src>

<mosaic_0001>
module attributes {stable_mosaic.version = 11 : i64} {
  func.func @mlp_kernel(%arg0: memref<2x4xf32, #tpu.memory_space<vmem>>, %arg1: memref<408x128xf32, #tpu.memory_space<vmem>>, %arg2: memref<2x3xf32, #tpu.memory_space<vmem>>) attributes {dimension_semantics = [], scalar_prefetch = 0 : i64, scratch_operands = 0 : i64, tpu.core_type = #tpu.core_type<tc>} {
    %c0 = arith.constant 0 : index
    %c0_0 = arith.constant 0 : index
    %0 = vector.load %arg0[%c0, %c0_0] : memref<2x4xf32, #tpu.memory_space<vmem>>, vector<2x4xf32>
    %c0_1 = arith.constant 0 : index
    %c0_2 = arith.constant 0 : index
    %1 = vector.load %arg1[%c0_1, %c0_2] : memref<408x128xf32, #tpu.memory_space<vmem>>, vector<4x128xf32>
    %c128 = arith.constant 128 : index
    %c0_3 = arith.constant 0 : index
    %2 = vector.load %arg1[%c128, %c0_3] : memref<408x128xf32, #tpu.memory_space<vmem>>, vector<1x128xf32>
    %cst = arith.constant dense<0.000000e+00> : vector<2x128xf32>
    %3 = tpu.matmul %0, %1, %cst {dimension_numbers = #tpu.dot_dimension_numbers<[1], [0], [0], [1], [0, 0, 1, 1], [], []>} : vector<2x4xf32>, vector<4x128xf32>, vector<2x128xf32> -> vector<2x128xf32>
    %4 = vector.broadcast %2 : vector<1x128xf32> to vector<2x128xf32>
    %5 = arith.addf %3, %4 : vector<2x128xf32>
    %cst_4 = arith.constant 0.000000e+00 : f32
    %6 = vector.broadcast %cst_4 : f32 to vector<2x128xf32>
    %7 = arith.maximumf %5, %6 : vector<2x128xf32>
    %c136 = arith.constant 136 : index
    %c0_5 = arith.constant 0 : index
    %8 = vector.load %arg1[%c136, %c0_5] : memref<408x128xf32, #tpu.memory_space<vmem>>, vector<128x128xf32>
    %c264 = arith.constant 264 : index
    %c0_6 = arith.constant 0 : index
    %9 = vector.load %arg1[%c264, %c0_6] : memref<408x128xf32, #tpu.memory_space<vmem>>, vector<1x128xf32>
    %cst_7 = arith.constant dense<0.000000e+00> : vector<2x128xf32>
    %10 = tpu.matmul %7, %8, %cst_7 {dimension_numbers = #tpu.dot_dimension_numbers<[1], [0], [0], [1], [0, 0, 1, 1], [], []>} : vector<2x128xf32>, vector<128x128xf32>, vector<2x128xf32> -> vector<2x128xf32>
    %11 = vector.broadcast %9 : vector<1x128xf32> to vector<2x128xf32>
    %12 = arith.addf %10, %11 : vector<2x128xf32>
    %cst_8 = arith.constant 0.000000e+00 : f32
    %13 = vector.broadcast %cst_8 : f32 to vector<2x128xf32>
    %14 = arith.maximumf %12, %13 : vector<2x128xf32>
    %c272 = arith.constant 272 : index
    %c0_9 = arith.constant 0 : index
    %15 = vector.load %arg1[%c272, %c0_9] : memref<408x128xf32, #tpu.memory_space<vmem>>, vector<128x128xf32>
    %c400 = arith.constant 400 : index
    %c0_10 = arith.constant 0 : index
    %16 = vector.load %arg1[%c400, %c0_10] : memref<408x128xf32, #tpu.memory_space<vmem>>, vector<1x128xf32>
    %cst_11 = arith.constant dense<0.000000e+00> : vector<2x128xf32>
    %17 = tpu.matmul %14, %15, %cst_11 {dimension_numbers = #tpu.dot_dimension_numbers<[1], [0], [0], [1], [0, 0, 1, 1], [], []>} : vector<2x128xf32>, vector<128x128xf32>, vector<2x128xf32> -> vector<2x128xf32>
    %18 = vector.broadcast %16 : vector<1x128xf32> to vector<2x128xf32>
    %19 = arith.addf %17, %18 : vector<2x128xf32>
    %20 = vector.extract_strided_slice %19 {offsets = [0, 0], sizes = [2, 3], strides = [1, 1]} : vector<2x128xf32> to vector<2x3xf32>
    %c0_12 = arith.constant 0 : index
    %c0_13 = arith.constant 0 : index
    %21 = vector.load %arg2[%c0_12, %c0_13] : memref<2x3xf32, #tpu.memory_space<vmem>>, vector<2x3xf32>
    tpu.vector_store %arg2[%c0_12, %c0_13], %20 {strides = array<i32>} : memref<2x3xf32, #tpu.memory_space<vmem>>, vector<2x3xf32>,
    return
  }
}

</mosaic_0001>

<bundles_post_ra>
// kernel: network_forward.1
= control target key start
LH: loop header
LB: loop body
LE: loop exit
PB: predicated region body
PF: predicated region fallthrough
CT: control target
= control target key end

     0   :  { %7 = vsyncpa [#allocation3], 0  ;;  %s654_s0 = inlined_call_operand.hbm [shape: f32[2,4], index: 0, kind: input, shape index: {}]   ;;  %s655_s1 = inlined_call_operand.hbm [shape: f32[408,128], index: 1, kind: input, shape index: {}]   ;;  %s656_s2 = inlined_call_operand.hbm [shape: f32[2,3], index: 2, kind: output, shape index: {}]  }
   0x1   :  { %8 = vsyncpa [#allocation6], 0 }
   0x2   :  { %9 = vsyncpa [#allocation4], 0  ;;  %s569_s9 = smov [#allocation2]   ;;  %s570_s11 = smov [#allocation5]  }
   0x3   :  { %s16_s10 = sshll.u32 %s569_s9, 4  ;;  %s25_s12 = sshll.u32 %s570_s11, 4  ;;  %s17_s10 = int_to_ptr.vmem [resolvable:$true] %s16_s10  ;;  %s592_s12 = int_to_ptr.vmem [resolvable:$true] %s25_s12 }
   0x4   :  { %s497_s15 = scalar_lea.hbm %s654_s0, 32 }
   0x5   :  { %p498_p0 = scmp.ne.s32.totalorder %s654_s0, %s497_s15  ;;  %p501_p1 = scmp.lt.u32.totalorder %s497_s15, %s654_s0 }
   0x7   :  { %p503_p2 = pnand %p501_p1, %p498_p0 }
   0x9   :  { %506 = shalt.err (!%p503_p2)
}
   0xa   :  { %s507_s20 = scalar_lea.vmem %s17_s10, 32  ;;  %p512_p4 = scmp.lt.s32.totalorder %s17_s10, %s17_s10 }
   0xb   :  { %p508_p3 = scmp.ne.s32.totalorder %s17_s10, %s507_s20  ;;  %p513_p5 = scmp.lt.s32.totalorder %s507_s20, %s507_s20 }
   0xd   :  { %p514_p6 = por %p513_p5, %p512_p4 }
   0xf   :  { %p515_p7 = pnand %p514_p6, %p508_p3 }
  0x11   :  { %518 = shalt.err (!%p515_p7)
}
  0x12   :  { %19 = dma.hbm_to_vmem [thread:$0]  %s654_s0, 32, %s17_s10, [#allocation3]  }
  0x13   :  { %s519_s25 = scalar_lea.hbm %s655_s1, 6528 }
  0x14   :  { %p520_p8 = scmp.ne.s32.totalorder %s655_s1, %s519_s25  ;;  %p523_p9 = scmp.lt.u32.totalorder %s519_s25, %s655_s1 }
  0x16   :  { %p525_p10 = pnand %p523_p9, %p520_p8 }
  0x18   :  { %528 = shalt.err (!%p525_p10)
}
  0x19   :  { %s529_s30 = scalar_lea.vmem %s592_s12, 6528  ;;  %p534_p12 = scmp.lt.s32.totalorder %s592_s12, %s592_s12 }
  0x1a   :  { %p530_p11 = scmp.ne.s32.totalorder %s592_s12, %s529_s30  ;;  %p535_p13 = scmp.lt.s32.totalorder %s529_s30, %s529_s30 }
  0x1c   :  { %p536_p0 = por %p535_p13, %p534_p12 }
  0x1e   :  { %p537_p1 = pnand %p536_p0, %p530_p11 }
  0x20   :  { %540 = shalt.err (!%p537_p1)
}
  0x21   :  { %s571_s0 = smov 128   ;;  %s572_s3 = smov 8  }
  0x22   :  { %31 = dma.hbm_to_vmem [thread:$0]  %s655_s1, 6528, %s592_s12, [#allocation6], %s571_s0, %s571_s0, %s572_s3  }
  0x23   :  { %563 = dma.done.wait [#allocation3], 32  }
  0x24   :  { %564 = vsyncadd [#allocation3], 4294967264 }
  0x25   :  { %565 = dma.done.wait [#allocation6], 6528  }
  0x26   :  { %566 = vsyncadd [#allocation6], 4294960768  ;;  %v573_v0 = vmov 0.0   ;;  %vm574_vm0 = vmmov 0   ;;  %v575_v1 = vmov 0.0|0.0   ;;  %vm49_vm1 = vcmask 1043456  }
  0x27   :  { %366 = vmatprep.subr.mxu0 %v573_v0  ;;  %368 = vmatprep.mubr.msk.f32.mxu0 %vm574_vm0, %v573_v0  ;;  %vm45_vm2 = vcmask 31744   ;;  %v39_v2 = vld [vmem:[#allocation5] sm:$0xf]  ;;  %v38_v3 = vld [vmem:[#allocation2] sm:$0x3]  ;;  %v124_v4 = vld [vmem:[#allocation5 + $0x88] sm:$0xff] }
  0x28   :  { %441 = vmatprep.subr.bf16.mxu1 %v575_v1  ;;  %403 = vmatprep.mubr.msk.f32.mxu1 %vm574_vm0, %v573_v0  ;;  %v125_v5 = vld [vmem:[#allocation5 + $0x90] sm:$0xff]  ;;  %v126_v6 = vld [vmem:[#allocation5 + $0x98] sm:$0xff]  ;;  %v127_v7 = vld [vmem:[#allocation5 + $0xa0] sm:$0xff]  ;;  %s576_s1 = smov [#allocation7]   ;;  %vm307_vm3 = vcmask 17408  }
  0x29   :  { %367 = vmatpush3.msk.msra.mxu0 %vm49_vm1, %v39_v2  ;;  %v442_v8 = vpack.c.bf16 %v125_v5, %v124_v4  ;;  %v445_v9 = vpack.c.bf16 %v127_v7, %v126_v6  ;;  %v128_v10 = vld [vmem:[#allocation5 + $0xa8] sm:$0xff]  ;;  %v129_v11 = vld [vmem:[#allocation5 + $0xb0] sm:$0xff]  ;;  %v130_v13 = vld [vmem:[#allocation5 + $0xb8] sm:$0xff]  ;;  %s315_s6 = sshll.u32 %s576_s1, 4  ;;  %s316_s6 = int_to_ptr.vmem [resolvable:$true] %s315_s6 }
  0x2a   :  { %369 = vmatmul.mubr.msk.f32.vlgmr.msra.gmra.mrb[0].mxu0 %vm45_vm2, %v38_v3  ;;  %465 = vmatprep.subr.bf16.mxu0 %v575_v1  ;;  %v448_v12 = vpack.c.bf16 %v129_v11, %v128_v10  ;;  %v131_v14 = vld [vmem:[#allocation5 + $0xc0] sm:$0xff]  ;;  %v132_v16 = vld [vmem:[#allocation5 + $0xc8] sm:$0xff]  ;;  %v133_v17 = vld [vmem:[#allocation5 + $0xd0] sm:$0xff]  ;;  %s541_s7 = scalar_lea.vmem %s316_s6, 32  ;;  %p546_p3 = scmp.lt.s32.totalorder %s316_s6, %s316_s6 }
  0x2b   :  { %438 = vmatprep.mubr.msk.f32.mxu0 %vm574_vm0, %v573_v0  ;;  %443 = vmatpush3.bf16.msra.mxu1 %v442_v8  ;;  %v451_v15 = vpack.c.bf16 %v131_v14, %v130_v13  ;;  %v454_v18 = vpack.c.bf16 %v133_v17, %v132_v16  ;;  %v134_v19 = vld [vmem:[#allocation5 + $0xd8] sm:$0xff]  ;;  %v135_v20 = vld [vmem:[#allocation5 + $0xe0] sm:$0xff]  ;;  %v136_v22 = vld [vmem:[#allocation5 + $0xe8] sm:$0xff]  ;;  %p542_p2 = scmp.ne.s32.totalorder %s316_s6, %s541_s7  ;;  %p547_p4 = scmp.lt.s32.totalorder %s541_s7, %s541_s7 }
  0x2c   :  { %444 = vmatprep.subr.bf16.mxu1 %v575_v1  ;;  %v457_v21 = vpack.c.bf16 %v135_v20, %v134_v19  ;;  %v137_v23 = vld [vmem:[#allocation5 + $0xf0] sm:$0xff]  ;;  %v138_v25 = vld [vmem:[#allocation5 + $0xf8] sm:$0xff]  ;;  %v139_v26 = vld [vmem:[#allocation5 + $0x100] sm:$0xff] }
  0x2d   :  { %v460_v24 = vpack.c.bf16 %v137_v23, %v136_v22  ;;  %v463_v27 = vpack.c.bf16 %v139_v26, %v138_v25  ;;  %v216_v28 = vld [vmem:[#allocation5 + $0x110] sm:$0xff]  ;;  %v217_v29 = vld [vmem:[#allocation5 + $0x118] sm:$0xff]  ;;  %v218_v30 = vld [vmem:[#allocation5 + $0x120] sm:$0xff]  ;;  %p548_p5 = por %p547_p4, %p546_p3 }
  0x2e   :  { %v466_v31 = vpack.c.bf16 %v217_v29, %v216_v28  ;;  %v219_v32 = vld [vmem:[#allocation5 + $0x128] sm:$0xff]  ;;  %v220_v34 = vld [vmem:[#allocation5 + $0x130] sm:$0xff]  ;;  %v221_v35 = vld [vmem:[#allocation5 + $0x138] sm:$0xff] }
  0x2f   :  { %446 = vmatpush3.bf16.msra.mxu1 %v445_v9  ;;  %v469_v33 = vpack.c.bf16 %v219_v32, %v218_v30  ;;  %v472_v36 = vpack.c.bf16 %v221_v35, %v220_v34  ;;  %v222_v37 = vld [vmem:[#allocation5 + $0x140] sm:$0xff]  ;;  %v223_v38 = vld [vmem:[#allocation5 + $0x148] sm:$0xff]  ;;  %v224_v40 = vld [vmem:[#allocation5 + $0x150] sm:$0xff]  ;;  %p549_p6 = pnand %p548_p5, %p542_p2 }
  0x30   :  { %447 = vmatprep.subr.bf16.mxu1 %v575_v1  ;;  %467 = vmatpush3.bf16.msra.mxu0 %v466_v31  ;;  %v475_v39 = vpack.c.bf16 %v223_v38, %v222_v37  ;;  %v225_v41 = vld [vmem:[#allocation5 + $0x158] sm:$0xff]  ;;  %v226_v43 = vld [vmem:[#allocation5 + $0x160] sm:$0xff]  ;;  %v227_v44 = vld [vmem:[#allocation5 + $0x168] sm:$0xff] }
  0x31   :  { %468 = vmatprep.subr.bf16.mxu0 %v575_v1  ;;  %v478_v42 = vpack.c.bf16 %v225_v41, %v224_v40  ;;  %v481_v45 = vpack.c.bf16 %v227_v44, %v226_v43  ;;  %v228_v46 = vld [vmem:[#allocation5 + $0x170] sm:$0xff]  ;;  %v229_v47 = vld [vmem:[#allocation5 + $0x178] sm:$0xff]  ;;  %v325_v49 = vld [vmem:[#allocation5 + $0x80] ss:$0 sm:$0xff] }
  0x32   :  { %v484_v48 = vpack.c.bf16 %v229_v47, %v228_v46  ;;  %v230_v54 = vld [vmem:[#allocation5 + $0x180] sm:$0xff]  ;;  %v231_v55 = vld [vmem:[#allocation5 + $0x188] sm:$0xff]  ;;  %v329_v62 = vld [vmem:[#allocation5 + $0x190] ss:$0 sm:$0xff] }
  0x33   :  { %449 = vmatpush3.bf16.msra.mxu1 %v448_v12  ;;  %v487_v56 = vpack.c.bf16 %v231_v55, %v230_v54  ;;  %v328_v57 = vld [vmem:[#allocation5 + $0x108] ss:$0 sm:$0xff] }
  0x34   :  { %450 = vmatprep.subr.bf16.mxu1 %v575_v1  ;;  %470 = vmatpush3.bf16.msra.mxu0 %v469_v33 }
  0x35   :  { %471 = vmatprep.subr.bf16.mxu0 %v575_v1 }
  0x37   :  { %452 = vmatpush3.bf16.msra.mxu1 %v451_v15 }
  0x38   :  { %453 = vmatprep.subr.bf16.mxu1 %v575_v1  ;;  %473 = vmatpush3.bf16.msra.mxu0 %v472_v36 }
  0x39   :  { %474 = vmatprep.subr.bf16.mxu0 %v575_v1 }
  0x3b   :  { %455 = vmatpush3.bf16.msra.mxu1 %v454_v18 }
  0x3c   :  { %456 = vmatprep.subr.bf16.mxu1 %v575_v1  ;;  %476 = vmatpush3.bf16.msra.mxu0 %v475_v39 }
  0x3d   :  { %477 = vmatprep.subr.bf16.mxu0 %v575_v1 }
  0x3f   :  { %458 = vmatpush3.bf16.msra.mxu1 %v457_v21 }
  0x40   :  { %459 = vmatprep.subr.bf16.mxu1 %v575_v1  ;;  %479 = vmatpush3.bf16.msra.mxu0 %v478_v42 }
  0x41   :  { %480 = vmatprep.subr.bf16.mxu0 %v575_v1 }
  0x43   :  { %461 = vmatpush3.bf16.msra.mxu1 %v460_v24 }
  0x44   :  { %462 = vmatprep.subr.bf16.mxu1 %v575_v1  ;;  %482 = vmatpush3.bf16.msra.mxu0 %v481_v45 }
  0x45   :  { %483 = vmatprep.subr.bf16.mxu0 %v575_v1 }
  0x47   :  { %464 = vmatpush3.bf16.msra.mxu1 %v463_v27 }
  0x48   :  { %485 = vmatpush3.bf16.msra.mxu0 %v484_v48 }
  0x49   :  { %486 = vmatprep.subr.bf16.mxu0 %v575_v1 }
  0x4c   :  { %488 = vmatpush3.bf16.msra.mxu0 %v487_v56 }
  0xfd   :  { %v119_v50 = vpop.f32.mrb[0].mxu0 }
  0xfe   :  { %v120_v51 = vadd.f32 %v325_v49, %v119_v50  ;;  %v370_v52 = vpop.f32.mrb[1].mxu0 }
 0x100   :  { %v123_v53 = vmax.f32 %v120_v51, 0.0 }
 0x102   :  { %404 = vmatmul.mubr.f32.vlgmr.msra.gmra.mrb[0].mxu1 %v123_v53 }
 0x1d5   :  { %v211_v58 = vpop.f32.mrb[0].mxu1 }
 0x1d6   :  { %v212_v59 = vadd.f32 %v328_v57, %v211_v58  ;;  %v405_v60 = vpop.f32.mrb[1].mxu1 }
 0x1d8   :  { %v215_v61 = vmax.f32 %v212_v59, 0.0 }
 0x1da   :  { %439 = vmatmul.mubr.f32.vlgmr.msra.gmra.mrb[2].mxu0 %v215_v61 }
 0x2ad   :  { %v303_v63 = vpop.f32.mrb[2].mxu0 }
 0x2ae   :  { %v304_v0 = vadd.f32 %v329_v62, %v303_v63  ;;  %v440_v1 = vpop.f32.mrb[3].mxu0 }
 0x2b0   :  { %308 = vst.msk [vmem:[#allocation7] sm:$0x3] %vm307_vm3, %v304_v0 }
 0x2b1   :  { %552 = shalt.err (!%p549_p6)
}
 0x2b2   :  { %s553_s10 = scalar_lea.hbm %s656_s2, 32 }
 0x2b3   :  { %p554_p7 = scmp.ne.s32.totalorder %s656_s2, %s553_s10  ;;  %p557_p8 = scmp.lt.u32.totalorder %s553_s10, %s656_s2 }
 0x2b5   :  { %p559_p9 = pnand %p557_p8, %p554_p7 }
 0x2b7   :  { %562 = shalt.err (!%p559_p9)
}
 0x2b8   :  { %318 = dma.vmem_to_hbm [thread:$0]  %s316_s6, 32, %s656_s2, [#allocation4]  }
 0x2b9   :  { %567 = dma.done.wait [#allocation4], 32  }
 0x2ba   :  { %568 = vsyncadd [#allocation4], 4294967264 }
 0x2bb   :  { %322 = vsyncpa [#allocation3], 1 }
 0x2bc   :  { %323 = vsyncpa [#allocation6], 1 }
 0x2bd   :  { %324 = vsyncpa [#allocation4], 1 }

</bundles_post_ra>
